<compile_context>
chip_gen: v6e
topology: v6e:2x2x1
jax: 0.10.0
libtpu: 0.0.40
codegen_flags: <defaults>
</compile_context>

<pallas_src>
import jax
import jax.numpy as jnp
from jax import lax
from jax.experimental import pallas as pl
from jax.experimental.pallas import tpu as pltpu

# ---- model dims (mirror the PyTorch module) --------------------------------
CHAR_LIST = ['h', 'e', 'l', 'o']
NUM_EMBEDDING = len(CHAR_LIST)   # 4
EMBEDDING_DIM = 128
HIDDEN_SIZE = 256
FC_PAD = 128                     # lane-dense width for the fc output
SUBLANE = 8                      # batch padded to a full sublane tile


# ---- Pallas kernel ----------------------------------------------------------
def char_rnn_kernel(tok_ref,      # (T*BP, 1) int32  time-major token ids (BP-padded)
                    h0_ref,       # (BP, H)   f32    initial hidden state (padded)
                    embproj_ref,  # (V, H)    f32    emb @ W_ih^T + b_ih + b_hh
                    whh_ref,      # (H, H)    f32    = W_hh^T
                    wfc_hbm,      # (H, VP)   f32    = W_fc^T zero-padded, in HBM (ANY)
                    bfc_ref,      # (1, VP)   f32    = b_fc zero-padded
                    out_ref,      # (BP, VP)  f32    padded logits of last timestep
                    hN_ref,       # (BP, H)   f32    final hidden state (padded)
                    pre_ref,      # (T*BP, H) f32    VMEM scratch: hoisted input proj.
                    wfc_vmem,     # (H, VP)   f32    VMEM scratch for W_fc^T
                    fc_sem):      # DMA semaphore for the W_fc copy
    TB = tok_ref.shape[0]
    BP = h0_ref.shape[0]
    V = embproj_ref.shape[0]
    T = TB // BP

    # Kick off W_fc^T HBM->VMEM now; it is only needed after the recurrence, so
    # the transfer is hidden behind the serial tanh/matmul chain.
    fc_copy = pltpu.make_async_copy(wfc_hbm, wfc_vmem, fc_sem)
    fc_copy.start()

    # Fused embedding lookup, hoisted out of the recurrence:
    #   one_hot(tokens) @ (emb @ W_ih^T + b_ih + b_hh)   (table precomputed in wrapper)
    onehot = (lax.broadcasted_iota(jnp.int32, (TB, V), 1)
              == tok_ref[...]).astype(jnp.float32)                      # (T*BP, V)
    pre_ref[...] = jnp.dot(onehot, embproj_ref[...],
                           preferred_element_type=jnp.float32)          # (T*BP, H)

    # Recurrence: only h @ W_hh^T remains on the serial dependency chain.
    # T is small and static -> fully unrolled (no scf.for per-step overhead).
    h = h0_ref[...]
    for t in range(T):
        # Static, sublane-aligned slice (BP == 8): plain vld, no masking.
        pre_t = pre_ref[pl.ds(t * BP, BP), :]
        # Re-read W_hh^T from VMEM each step instead of keeping a 64-vreg value
        # live across the unrolled loop (avoids spills on the serial chain).
        h = jnp.tanh(jnp.dot(h, whh_ref[...],
                             preferred_element_type=jnp.float32) + pre_t)

    hN_ref[...] = h

    # Final FC: wait for the overlapped W_fc transfer, then a lane-dense
    # (BP, 128) unmasked store; the real logits are the first V columns.
    fc_copy.wait()
    out_ref[...] = (jnp.dot(h, wfc_vmem[...], preferred_element_type=jnp.float32)
                    + bfc_ref[...])


# ---- wrapper -----------------------------------------------------------------
def char_rnn_forward(x_tokens, hidden, params):
    """x_tokens: (B, T) int32; hidden: (1, B, H) f32.

    Returns (logits (B, V), hidden (1, B, H)) with nn.RNN(batch_first=True) semantics.
    """
    emb, w_ih, w_hh, b_ih, b_hh, w_fc, b_fc = params
    B, T = x_tokens.shape
    H = w_hh.shape[0]
    V = w_fc.shape[0]
    VP = FC_PAD
    BP = ((B + SUBLANE - 1) // SUBLANE) * SUBLANE      # batch padded to sublane tile

    # Parameter-only precompute (input independent): (V, H) ~4 KiB table.
    # In a real decode loop this (and the transposed/padded weights below) would
    # be hoisted out and reused across calls.
    emb_proj = emb @ w_ih.T + (b_ih + b_hh)            # (V, H) f32

    # Tiny per-call glue: time-major, batch-padded token ids + padded h0.
    tok_tm = jnp.pad(x_tokens.astype(jnp.int32).T,     # (T, B) -> (T, BP)
                     ((0, 0), (0, BP - B))).reshape(T * BP, 1)
    h0p = jnp.pad(hidden[0], ((0, BP - B), (0, 0)))    # (BP, H)
    w_fc_p = jnp.pad(w_fc.T, ((0, 0), (0, VP - V)))    # (H, VP) lane-dense, zero pad
    b_fc_p = jnp.pad(b_fc.reshape(1, V), ((0, 0), (0, VP - V)))  # (1, VP)

    vmem = pl.BlockSpec(memory_space=pltpu.MemorySpace.VMEM)
    hbm = pl.BlockSpec(memory_space=pl.ANY)            # W_fc^T stays in HBM; manual DMA

    out_p, hNp = pl.pallas_call(
        char_rnn_kernel,
        out_shape=(jax.ShapeDtypeStruct((BP, VP), jnp.float32),
                   jax.ShapeDtypeStruct((BP, H), jnp.float32)),
        in_specs=[vmem, vmem, vmem, vmem, hbm, vmem],
        out_specs=(vmem, vmem),
        scratch_shapes=[pltpu.VMEM((T * BP, H), jnp.float32),   # pre-activations
                        pltpu.VMEM((H, VP), jnp.float32),       # W_fc^T landing buffer
                        pltpu.SemaphoreType.DMA],
        input_output_aliases={1: 1},                   # h0 buffer reused for hN
    )(tok_tm, h0p, emb_proj, w_hh.T, w_fc_p, b_fc_p)

    return out_p[:B, :V], hNp[None, :B, :]


# ---- deterministic parameter init (synthetic, no checkpoint) ----------------
def init_params(key, num_embedding, embedding_dim, hidden_size):
    ks = jax.random.split(key, 7)
    bound = 1.0 / jnp.sqrt(hidden_size)
    emb = jax.random.normal(ks[0], (num_embedding, embedding_dim), jnp.float32)
    w_ih = jax.random.uniform(ks[1], (hidden_size, embedding_dim), jnp.float32, -bound, bound)
    w_hh = jax.random.uniform(ks[2], (hidden_size, hidden_size), jnp.float32, -bound, bound)
    b_ih = jax.random.uniform(ks[3], (hidden_size,), jnp.float32, -bound, bound)
    b_hh = jax.random.uniform(ks[4], (hidden_size,), jnp.float32, -bound, bound)
    w_fc = jax.random.uniform(ks[5], (num_embedding, hidden_size), jnp.float32, -bound, bound)
    b_fc = jax.random.uniform(ks[6], (num_embedding,), jnp.float32, -bound, bound)
    return (emb, w_ih, w_hh, b_ih, b_hh, w_fc, b_fc)


# ---- pure-JAX reference for sanity ------------------------------------------
def char_rnn_reference(x_tokens, hidden, params):
    emb, w_ih, w_hh, b_ih, b_hh, w_fc, b_fc = params
    x_emb = jnp.take(emb, x_tokens, axis=0)          # (B, T, E)
    h = hidden[0]
    for t in range(x_tokens.shape[1]):
        h = jnp.tanh(x_emb[:, t, :] @ w_ih.T + b_ih + h @ w_hh.T + b_hh)
    out = h @ w_fc.T + b_fc
    return out, h[None]


if __name__ == "__main__":
    key = jax.random.PRNGKey(0)
    params = init_params(key, NUM_EMBEDDING, EMBEDDING_DIM, HIDDEN_SIZE)

    char_to_idx = {ch: i for i, ch in enumerate(CHAR_LIST)}
    seq = jnp.array([char_to_idx[c] for c in 'hello'], dtype=jnp.int32)  # (5,)
    B = 2
    x_tokens = jnp.stack([seq, seq[::-1]], axis=0)                       # (2, 5)
    hidden0 = jnp.zeros((1, B, HIDDEN_SIZE), jnp.float32)

    out, hidden = jax.jit(char_rnn_forward)(x_tokens, hidden0, params)
    jax.block_until_ready((out, hidden))

    ref_out, ref_hidden = char_rnn_reference(x_tokens, hidden0, params)
    assert out.shape == (B, NUM_EMBEDDING)
    assert hidden.shape == (1, B, HIDDEN_SIZE)
    assert jnp.allclose(out, ref_out, atol=1e-4, rtol=1e-4)
    assert jnp.allclose(hidden, ref_hidden, atol=1e-4, rtol=1e-4)

    print("KERNEL_OK")
</pallas_src>

<mosaic_0001>
module attributes {stable_mosaic.version = 11 : i64} {
  func.func @char_rnn_kernel(%arg0: memref<40x1xi32, #tpu.memory_space<vmem>>, %arg1: memref<8x256xf32, #tpu.memory_space<vmem>>, %arg2: memref<4x256xf32, #tpu.memory_space<vmem>>, %arg3: memref<256x256xf32, #tpu.memory_space<vmem>>, %arg4: memref<256x128xf32, #tpu.memory_space<any>>, %arg5: memref<1x128xf32, #tpu.memory_space<vmem>>, %arg6: memref<8x128xf32, #tpu.memory_space<vmem>>, %arg7: memref<8x256xf32, #tpu.memory_space<vmem>>, %arg8: memref<40x256xf32, #tpu.memory_space<vmem>>, %arg9: memref<256x128xf32, #tpu.memory_space<vmem>>, %arg10: memref<!tpu.dma_semaphore, #tpu.memory_space<semaphore_mem>>) attributes {dimension_semantics = [], scalar_prefetch = 0 : i64, scratch_operands = 3 : i64, tpu.core_type = #tpu.core_type<tc>} {
    tpu.enqueue_dma source(%arg4 : memref<256x128xf32, #tpu.memory_space<any>>) target(%arg9 : memref<256x128xf32, #tpu.memory_space<vmem>>) target_semaphore(%arg10 : memref<!tpu.dma_semaphore, #tpu.memory_space<semaphore_mem>>)
    %0 = tpu.iota {dimensions = array<i32: 1>} : vector<40x4xi32>
    %c0 = arith.constant 0 : index
    %c0_0 = arith.constant 0 : index
    %1 = vector.load %arg0[%c0, %c0_0] : memref<40x1xi32, #tpu.memory_space<vmem>>, vector<40x1xi32>
    %2 = vector.broadcast %1 : vector<40x1xi32> to vector<40x4xi32>
    %3 = arith.cmpi eq, %0, %2 : vector<40x4xi32>
    %4 = arith.extui %3 : vector<40x4xi1> to vector<40x4xi32>
    %5 = arith.sitofp %4 : vector<40x4xi32> to vector<40x4xf32>
    %c0_1 = arith.constant 0 : index
    %c0_2 = arith.constant 0 : index
    %6 = vector.load %arg2[%c0_1, %c0_2] : memref<4x256xf32, #tpu.memory_space<vmem>>, vector<4x256xf32>
    %cst = arith.constant dense<0.000000e+00> : vector<40x256xf32>
    %7 = tpu.matmul %5, %6, %cst {dimension_numbers = #tpu.dot_dimension_numbers<[1], [0], [0], [1], [0, 0, 1, 1], [], []>} : vector<40x4xf32>, vector<4x256xf32>, vector<40x256xf32> -> vector<40x256xf32>
    %c0_3 = arith.constant 0 : index
    %c0_4 = arith.constant 0 : index
    %8 = vector.load %arg8[%c0_3, %c0_4] : memref<40x256xf32, #tpu.memory_space<vmem>>, vector<40x256xf32>
    tpu.vector_store %arg8[%c0_3, %c0_4], %7 {strides = array<i32>} : memref<40x256xf32, #tpu.memory_space<vmem>>, vector<40x256xf32>,
    %c0_5 = arith.constant 0 : index
    %c0_6 = arith.constant 0 : index
    %9 = vector.load %arg1[%c0_5, %c0_6] : memref<8x256xf32, #tpu.memory_space<vmem>>, vector<8x256xf32>
    %c0_7 = arith.constant 0 : index
    %c0_8 = arith.constant 0 : index
    %10 = vector.load %arg8[%c0_7, %c0_8] : memref<40x256xf32, #tpu.memory_space<vmem>>, vector<8x256xf32>
    %c0_9 = arith.constant 0 : index
    %c0_10 = arith.constant 0 : index
    %11 = vector.load %arg3[%c0_9, %c0_10] : memref<256x256xf32, #tpu.memory_space<vmem>>, vector<256x256xf32>
    %cst_11 = arith.constant dense<0.000000e+00> : vector<8x256xf32>
    %12 = tpu.matmul %9, %11, %cst_11 {dimension_numbers = #tpu.dot_dimension_numbers<[1], [0], [0], [1], [0, 0, 1, 1], [], []>} : vector<8x256xf32>, vector<256x256xf32>, vector<8x256xf32> -> vector<8x256xf32>
    %13 = arith.addf %12, %10 : vector<8x256xf32>
    %14 = math.tanh %13 : vector<8x256xf32>
    %c8 = arith.constant 8 : index
    %c0_12 = arith.constant 0 : index
    %15 = vector.load %arg8[%c8, %c0_12] : memref<40x256xf32, #tpu.memory_space<vmem>>, vector<8x256xf32>
    %c0_13 = arith.constant 0 : index
    %c0_14 = arith.constant 0 : index
    %16 = vector.load %arg3[%c0_13, %c0_14] : memref<256x256xf32, #tpu.memory_space<vmem>>, vector<256x256xf32>
    %cst_15 = arith.constant dense<0.000000e+00> : vector<8x256xf32>
    %17 = tpu.matmul %14, %16, %cst_15 {dimension_numbers = #tpu.dot_dimension_numbers<[1], [0], [0], [1], [0, 0, 1, 1], [], []>} : vector<8x256xf32>, vector<256x256xf32>, vector<8x256xf32> -> vector<8x256xf32>
    %18 = arith.addf %17, %15 : vector<8x256xf32>
    %19 = math.tanh %18 : vector<8x256xf32>
    %c16 = arith.constant 16 : index
    %c0_16 = arith.constant 0 : index
    %20 = vector.load %arg8[%c16, %c0_16] : memref<40x256xf32, #tpu.memory_space<vmem>>, vector<8x256xf32>
    %c0_17 = arith.constant 0 : index
    %c0_18 = arith.constant 0 : index
    %21 = vector.load %arg3[%c0_17, %c0_18] : memref<256x256xf32, #tpu.memory_space<vmem>>, vector<256x256xf32>
    %cst_19 = arith.constant dense<0.000000e+00> : vector<8x256xf32>
    %22 = tpu.matmul %19, %21, %cst_19 {dimension_numbers = #tpu.dot_dimension_numbers<[1], [0], [0], [1], [0, 0, 1, 1], [], []>} : vector<8x256xf32>, vector<256x256xf32>, vector<8x256xf32> -> vector<8x256xf32>
    %23 = arith.addf %22, %20 : vector<8x256xf32>
    %24 = math.tanh %23 : vector<8x256xf32>
    %c24 = arith.constant 24 : index
    %c0_20 = arith.constant 0 : index
    %25 = vector.load %arg8[%c24, %c0_20] : memref<40x256xf32, #tpu.memory_space<vmem>>, vector<8x256xf32>
    %c0_21 = arith.constant 0 : index
    %c0_22 = arith.constant 0 : index
    %26 = vector.load %arg3[%c0_21, %c0_22] : memref<256x256xf32, #tpu.memory_space<vmem>>, vector<256x256xf32>
    %cst_23 = arith.constant dense<0.000000e+00> : vector<8x256xf32>
    %27 = tpu.matmul %24, %26, %cst_23 {dimension_numbers = #tpu.dot_dimension_numbers<[1], [0], [0], [1], [0, 0, 1, 1], [], []>} : vector<8x256xf32>, vector<256x256xf32>, vector<8x256xf32> -> vector<8x256xf32>
    %28 = arith.addf %27, %25 : vector<8x256xf32>
    %29 = math.tanh %28 : vector<8x256xf32>
    %c32 = arith.constant 32 : index
    %c0_24 = arith.constant 0 : index
    %30 = vector.load %arg8[%c32, %c0_24] : memref<40x256xf32, #tpu.memory_space<vmem>>, vector<8x256xf32>
    %c0_25 = arith.constant 0 : index
    %c0_26 = arith.constant 0 : index
    %31 = vector.load %arg3[%c0_25, %c0_26] : memref<256x256xf32, #tpu.memory_space<vmem>>, vector<256x256xf32>
    %cst_27 = arith.constant dense<0.000000e+00> : vector<8x256xf32>
    %32 = tpu.matmul %29, %31, %cst_27 {dimension_numbers = #tpu.dot_dimension_numbers<[1], [0], [0], [1], [0, 0, 1, 1], [], []>} : vector<8x256xf32>, vector<256x256xf32>, vector<8x256xf32> -> vector<8x256xf32>
    %33 = arith.addf %32, %30 : vector<8x256xf32>
    %34 = math.tanh %33 : vector<8x256xf32>
    %c0_28 = arith.constant 0 : index
    %c0_29 = arith.constant 0 : index
    %35 = vector.load %arg7[%c0_28, %c0_29] : memref<8x256xf32, #tpu.memory_space<vmem>>, vector<8x256xf32>
    tpu.vector_store %arg7[%c0_28, %c0_29], %34 {strides = array<i32>} : memref<8x256xf32, #tpu.memory_space<vmem>>, vector<8x256xf32>,
    tpu.wait_dma2 semaphore(%arg10 : memref<!tpu.dma_semaphore, #tpu.memory_space<semaphore_mem>>) src(%arg4 : memref<256x128xf32, #tpu.memory_space<any>>) dst(%arg9 : memref<256x128xf32, #tpu.memory_space<vmem>>)
    %c0_30 = arith.constant 0 : index
    %c0_31 = arith.constant 0 : index
    %36 = vector.load %arg9[%c0_30, %c0_31] : memref<256x128xf32, #tpu.memory_space<vmem>>, vector<256x128xf32>
    %cst_32 = arith.constant dense<0.000000e+00> : vector<8x128xf32>
    %37 = tpu.matmul %34, %36, %cst_32 {dimension_numbers = #tpu.dot_dimension_numbers<[1], [0], [0], [1], [0, 0, 1, 1], [], []>} : vector<8x256xf32>, vector<256x128xf32>, vector<8x128xf32> -> vector<8x128xf32>
    %c0_33 = arith.constant 0 : index
    %c0_34 = arith.constant 0 : index
    %38 = vector.load %arg5[%c0_33, %c0_34] : memref<1x128xf32, #tpu.memory_space<vmem>>, vector<1x128xf32>
    %39 = vector.broadcast %38 : vector<1x128xf32> to vector<8x128xf32>
    %40 = arith.addf %37, %39 : vector<8x128xf32>
    %c0_35 = arith.constant 0 : index
    %c0_36 = arith.constant 0 : index
    %41 = vector.load %arg6[%c0_35, %c0_36] : memref<8x128xf32, #tpu.memory_space<vmem>>, vector<8x128xf32>
    tpu.vector_store %arg6[%c0_35, %c0_36], %40 {strides = array<i32>} : memref<8x128xf32, #tpu.memory_space<vmem>>, vector<8x128xf32>,
    return
  }
}

</mosaic_0001>

<bundles_post_ra>
// kernel: char_rnn_forward.1
= control target key start
LH: loop header
LB: loop body
LE: loop exit
PB: predicated region body
PF: predicated region fallthrough
CT: control target
= control target key end

     0   :  { %v948_v34 = vmov 0   ;;  %v1899_v40 = vmov 0.0   ;;  %s1891_s0 = inlined_call_operand.vmem [shape: s32[40,1], index: 0, kind: input, shape index: {}]   ;;  %s1892_s1 = inlined_call_operand.vmem [shape: f32[8,256], index: 1, kind: input, shape index: {}, may-alias: {1,7}]   ;;  %s1893_s2 = inlined_call_operand.vmem [shape: f32[4,256], index: 2, kind: input, shape index: {}]   ;;  %s1894_s3 = inlined_call_operand.vmem [shape: f32[256,256], index: 3, kind: input, shape index: {}]   ;;  %s1895_s4 = inlined_call_operand.vmem [shape: f32[256,128], index: 4, kind: input, shape index: {}]   ;;  %s1896_s5 = inlined_call_operand.vmem [shape: f32[1,128], index: 5, kind: input, shape index: {}]   ;;  %s1897_s6 = inlined_call_operand.vmem [shape: f32[8,128], index: 6, kind: output, shape index: {0}]   ;;  %s1898_s7 = inlined_call_operand.vmem [shape: f32[8,256], index: 7, kind: output, shape index: {1}, may-alias: {1,7}]  }
   0x1   :  { %v993_v0 = vld [vmem:[%s1895_s4] sm:$0xff]  ;;  %v998_v1 = vld [vmem:[%s1895_s4 + $0x8] sm:$0xff]  ;;  %v1003_v2 = vld [vmem:[%s1895_s4 + $0x10] sm:$0xff]  ;;  %923 = vset.pattern.permute.xlu0 %v948_v34  ;;  %924 = vset.pattern.permute.xlu1 %v948_v34 }
   0x2   :  { %1934 = vst [vmem:[#allocation7_spill] sm:$0xff] %v993_v0  ;;  %1935 = vst [vmem:[#allocation8_spill] sm:$0xff] %v998_v1  ;;  %v1008_v3 = vld [vmem:[%s1895_s4 + $0x18] sm:$0xff]  ;;  %v1013_v4 = vld [vmem:[%s1895_s4 + $0x20] sm:$0xff]  ;;  %253 = vmatprep.mubr.f32.mxu0 %v1899_v40 }
   0x3   :  { %1936 = vst [vmem:[#allocation9_spill] sm:$0xff] %v1003_v2  ;;  %1937 = vst [vmem:[#allocation10_spill] sm:$0xff] %v1008_v3  ;;  %v1018_v5 = vld [vmem:[%s1895_s4 + $0x28] sm:$0xff]  ;;  %v1023_v6 = vld [vmem:[%s1895_s4 + $0x30] sm:$0xff] }
   0x4   :  { %1938 = vst [vmem:[#allocation11_spill] sm:$0xff] %v1013_v4  ;;  %1939 = vst [vmem:[#allocation12_spill] sm:$0xff] %v1018_v5  ;;  %v1028_v7 = vld [vmem:[%s1895_s4 + $0x38] sm:$0xff]  ;;  %v1033_v8 = vld [vmem:[%s1895_s4 + $0x40] sm:$0xff] }
   0x5   :  { %1940 = vst [vmem:[#allocation13_spill] sm:$0xff] %v1023_v6  ;;  %1941 = vst [vmem:[#allocation14_spill] sm:$0xff] %v1028_v7  ;;  %v1038_v9 = vld [vmem:[%s1895_s4 + $0x48] sm:$0xff]  ;;  %v1043_v10 = vld [vmem:[%s1895_s4 + $0x50] sm:$0xff] }
   0x6   :  { %1942 = vst [vmem:[#allocation15_spill] sm:$0xff] %v1033_v8  ;;  %1943 = vst [vmem:[#allocation16_spill] sm:$0xff] %v1038_v9  ;;  %v1048_v11 = vld [vmem:[%s1895_s4 + $0x58] sm:$0xff]  ;;  %v1053_v12 = vld [vmem:[%s1895_s4 + $0x60] sm:$0xff] }
   0x7   :  { %1944 = vst [vmem:[#allocation17_spill] sm:$0xff] %v1043_v10  ;;  %1945 = vst [vmem:[#allocation18_spill] sm:$0xff] %v1048_v11  ;;  %v1058_v13 = vld [vmem:[%s1895_s4 + $0x68] sm:$0xff]  ;;  %v1063_v14 = vld [vmem:[%s1895_s4 + $0x70] sm:$0xff] }
   0x8   :  { %1946 = vst [vmem:[#allocation19_spill] sm:$0xff] %v1053_v12  ;;  %1947 = vst [vmem:[#allocation20_spill] sm:$0xff] %v1058_v13  ;;  %v1068_v15 = vld [vmem:[%s1895_s4 + $0x78] sm:$0xff]  ;;  %v1073_v16 = vld [vmem:[%s1895_s4 + $0x80] sm:$0xff] }
   0x9   :  { %1948 = vst [vmem:[#allocation21_spill] sm:$0xff] %v1063_v14  ;;  %1949 = vst [vmem:[#allocation22_spill] sm:$0xff] %v1068_v15  ;;  %v1078_v17 = vld [vmem:[%s1895_s4 + $0x88] sm:$0xff]  ;;  %v1083_v18 = vld [vmem:[%s1895_s4 + $0x90] sm:$0xff] }
   0xa   :  { %1950 = vst [vmem:[#allocation23_spill] sm:$0xff] %v1073_v16  ;;  %1951 = vst [vmem:[#allocation24_spill] sm:$0xff] %v1078_v17  ;;  %v1088_v19 = vld [vmem:[%s1895_s4 + $0x98] sm:$0xff]  ;;  %v1093_v20 = vld [vmem:[%s1895_s4 + $0xa0] sm:$0xff] }
   0xb   :  { %1952 = vst [vmem:[#allocation25_spill] sm:$0xff] %v1083_v18  ;;  %1953 = vst [vmem:[#allocation26_spill] sm:$0xff] %v1088_v19  ;;  %v1098_v21 = vld [vmem:[%s1895_s4 + $0xa8] sm:$0xff]  ;;  %v1103_v22 = vld [vmem:[%s1895_s4 + $0xb0] sm:$0xff] }
   0xc   :  { %1954 = vst [vmem:[#allocation27_spill] sm:$0xff] %v1093_v20  ;;  %1955 = vst [vmem:[#allocation28_spill] sm:$0xff] %v1098_v21  ;;  %v1108_v23 = vld [vmem:[%s1895_s4 + $0xb8] sm:$0xff]  ;;  %v1113_v24 = vld [vmem:[%s1895_s4 + $0xc0] sm:$0xff] }
   0xd   :  { %1956 = vst [vmem:[#allocation29_spill] sm:$0xff] %v1103_v22  ;;  %1957 = vst [vmem:[#allocation30_spill] sm:$0xff] %v1108_v23  ;;  %v1118_v25 = vld [vmem:[%s1895_s4 + $0xc8] sm:$0xff]  ;;  %v1123_v26 = vld [vmem:[%s1895_s4 + $0xd0] sm:$0xff] }
   0xe   :  { %1958 = vst [vmem:[#allocation31_spill] sm:$0xff] %v1113_v24  ;;  %1959 = vst [vmem:[#allocation32_spill] sm:$0xff] %v1118_v25  ;;  %v1128_v27 = vld [vmem:[%s1895_s4 + $0xd8] sm:$0xff]  ;;  %v1133_v28 = vld [vmem:[%s1895_s4 + $0xe0] sm:$0xff] }
   0xf   :  { %1960 = vst [vmem:[#allocation33_spill] sm:$0xff] %v1123_v26  ;;  %1961 = vst [vmem:[#allocation34_spill] sm:$0xff] %v1128_v27  ;;  %v1138_v29 = vld [vmem:[%s1895_s4 + $0xe8] sm:$0xff]  ;;  %v1143_v30 = vld [vmem:[%s1895_s4 + $0xf0] sm:$0xff] }
  0x10   :  { %1962 = vst [vmem:[#allocation35_spill] sm:$0xff] %v1133_v28  ;;  %1963 = vst [vmem:[#allocation36_spill] sm:$0xff] %v1138_v29  ;;  %v1148_v31 = vld [vmem:[%s1895_s4 + $0xf8] sm:$0xff]  ;;  %v130_v32 = vld [vmem:[%s1891_s0] sm:$0xff] }
  0x11   :  { %1964 = vst [vmem:[#allocation37_spill] sm:$0xff] %v1143_v30  ;;  %1965 = vst [vmem:[#allocation38_spill] sm:$0xff] %v1148_v31  ;;  %v132_v33 = vld [vmem:[%s1891_s0 + $0x10] sm:$0xff]  ;;  %v1159_v35 = vld [vmem:[%s1894_s3 + $0xf8] sm:$0xff]  ;;  %136 = vperm.xlu0 %923, %v130_v32  }
  0x12   :  { %142 = vperm.xlu1 %924, %v132_v33   ;;  %v1164_v36 = vld [vmem:[%s1894_s3 + $0xf0] sm:$0xff]  ;;  %v1169_v37 = vld [vmem:[%s1894_s3 + $0xe8] sm:$0xff]  ;;  %v133_v39 = vld [vmem:[%s1891_s0 + $0x18] sm:$0xff]  ;;  %362 = vmatprep.subr.mxu1 %v1159_v35 }
  0x13   :  { %v131_v38 = vld [vmem:[%s1891_s0 + $0x8] sm:$0xff]  ;;  %363 = vmatpush1.msra.mxu1 %v1164_v36  ;;  %v1183_v41 = vld [vmem:[%s1894_s3 + $0xe0] sm:$0xff]  ;;  %v1189_v42 = vld [vmem:[%s1894_s3 + $0xd8] sm:$0xff] }
  0x14   :  { %364 = vmatprep.subr.mxu1 %v1169_v37  ;;  %v1194_v43 = vld [vmem:[%s1894_s3 + $0xd0] sm:$0xff]  ;;  %v134_v44 = vld [vmem:[%s1891_s0 + $0x20] sm:$0xff]  ;;  %v1203_v45 = vld [vmem:[%s1894_s3 + $0xc8] sm:$0xff] }
  0x15   :  { %139 = vperm.xlu0 %923, %v131_v38   ;;  %365 = vmatpush1.msra.mxu1 %v1183_v41  ;;  %v1209_v46 = vld [vmem:[%s1894_s3 + $0xc0] sm:$0xff]  ;;  %v1215_v47 = vld [vmem:[%s1894_s3 + $0xb8] sm:$0xff]  ;;  %v1221_v48 = vld [vmem:[%s1894_s3 + $0xb0] sm:$0xff] }
  0x16   :  { %145 = vperm.xlu1 %924, %v133_v39   ;;  %366 = vmatprep.subr.mxu1 %v1189_v42  ;;  %v1227_v49 = vld [vmem:[%s1894_s3 + $0xa8] sm:$0xff]  ;;  %v1233_v50 = vld [vmem:[%s1894_s3 + $0xa0] sm:$0xff]  ;;  %v1239_v51 = vld [vmem:[%s1894_s3 + $0x98] sm:$0xff] }
  0x17   :  { %367 = vmatpush1.msra.mxu1 %v1194_v43  ;;  %v1245_v52 = vld [vmem:[%s1894_s3 + $0x90] sm:$0xff]  ;;  %v1251_v53 = vld [vmem:[%s1894_s3 + $0x88] sm:$0xff]  ;;  %v1257_v54 = vld [vmem:[%s1894_s3 + $0x80] sm:$0xff] }
  0x18   :  { %368 = vmatprep.subr.mxu1 %v1203_v45  ;;  %v1263_v55 = vld [vmem:[%s1894_s3 + $0x78] sm:$0xff]  ;;  %v1269_v56 = vld [vmem:[%s1894_s3 + $0x70] sm:$0xff]  ;;  %v1275_v57 = vld [vmem:[%s1894_s3 + $0x68] sm:$0xff] }
  0x19   :  { %148 = vperm.xlu0 %923, %v134_v44   ;;  %369 = vmatpush1.msra.mxu1 %v1209_v46  ;;  %v1281_v58 = vld [vmem:[%s1894_s3 + $0x60] sm:$0xff]  ;;  %v1287_v59 = vld [vmem:[%s1894_s3 + $0x58] sm:$0xff]  ;;  %v1293_v60 = vld [vmem:[%s1894_s3 + $0x50] sm:$0xff] }
  0x1a   :  { %370 = vmatprep.subr.mxu1 %v1215_v47  ;;  %v1298_v61 = vld [vmem:[%s1894_s3 + $0x48] sm:$0xff] }
  0x1b   :  { %371 = vmatpush1.msra.mxu1 %v1221_v48  ;;  %v295_v62 = vld [vmem:[%s1892_s1 + $0x8] sm:$0xff] }
  0x1c   :  { %372 = vmatprep.subr.mxu1 %v1227_v49 }
  0x1d   :  { %373 = vmatpush1.msra.mxu1 %v1233_v50 }
  0x1e   :  { %374 = vmatprep.subr.mxu1 %v1239_v51 }
  0x1f   :  { %375 = vmatpush1.msra.mxu1 %v1245_v52 }
  0x20   :  { %376 = vmatprep.subr.mxu1 %v1251_v53 }
  0x21   :  { %377 = vmatpush1.msra.mxu1 %v1257_v54 }
  0x22   :  { %378 = vmatprep.subr.mxu1 %v1263_v55 }
  0x23   :  { %379 = vmatpush1.msra.mxu1 %v1269_v56 }
  0x24   :  { %380 = vmatprep.subr.mxu1 %v1275_v57 }
  0x25   :  { %381 = vmatpush1.msra.mxu1 %v1281_v58 }
  0x26   :  { %127 = vsyncadd [#allocation4], 4096  ;;  %v165_v63 = vld [vmem:[%s1893_s2] sm:$0xff]  ;;  %vm184_vm0 = vcmask 1043456   ;;  %382 = vmatprep.subr.mxu1 %v1287_v59  ;;  %426 = vmatprep.mubr.f32.mxu1 %v295_v62  ;;  %v1317_v34 = vld [vmem:[%s1894_s3 + $0x38] sm:$0xff]  ;;  %vm168_vm1 = vcmask 31744  }
  0x27   :  { %v1311_v32 = vld [vmem:[%s1894_s3 + $0x40] sm:$0xff]  ;;  %v167_v33 = vcombine.high %v165_v63, %v165_v63  ;;  %383 = vmatpush1.msra.mxu1 %v1293_v60  ;;  %v1323_v38 = vld [vmem:[%s1894_s3 + $0x30] sm:$0xff]  ;;  %v1329_v39 = vld [vmem:[%s1894_s3 + $0x28] sm:$0xff] }
  0x28   :  { %384 = vmatprep.subr.mxu1 %v1298_v61  ;;  %v1335_v44 = vld [vmem:[%s1894_s3 + $0x20] sm:$0xff]  ;;  %v1342_v62 = vld [vmem:[%s1894_s3 + $0x18] sm:$0xff]  ;;  %v1372_v16 = vld [vmem:[%s1894_s3 + $0x1f0] sm:$0xff] }
  0x29   :  { %877 = vmatprep.subr.msk.mxu0 %vm184_vm0, %v167_v33  ;;  %385 = vmatpush1.msra.mxu1 %v1311_v32  ;;  %v1354_v33 = vld [vmem:[%s1894_s3 + $0x8] sm:$0xff]  ;;  %v1360_v40 = vld [vmem:[%s1894_s3] sm:$0xff]  ;;  %v1366_v0 = vld [vmem:[%s1894_s3 + $0x1f8] sm:$0xff] }
  0x2a   :  { %878 = vmatpush1.msk.msra.mxu0 %vm184_vm0, %v165_v63  ;;  %386 = vmatprep.subr.mxu1 %v1317_v34  ;;  %v1348_v63 = vld [vmem:[%s1894_s3 + $0x10] sm:$0xff]  ;;  %v1378_v1 = vld [vmem:[%s1894_s3 + $0x1e8] sm:$0xff]  ;;  %v1384_v17 = vld [vmem:[%s1894_s3 + $0x1e0] sm:$0xff] }
  0x2b   :  { %437 = vmatprep.subr.mxu0 %v1159_v35  ;;  %387 = vmatpush1.msra.mxu1 %v1323_v38  ;;  %v1390_v2 = vld [vmem:[%s1894_s3 + $0x1d8] sm:$0xff]  ;;  %v1396_v18 = vld [vmem:[%s1894_s3 + $0x1d0] sm:$0xff]  ;;  %v1402_v3 = vld [vmem:[%s1894_s3 + $0x1c8] sm:$0xff] }
  0x2c   :  { %388 = vmatprep.subr.mxu1 %v1329_v39  ;;  %v1408_v19 = vld [vmem:[%s1894_s3 + $0x1c0] sm:$0xff]  ;;  %v1414_v4 = vld [vmem:[%s1894_s3 + $0x1b8] sm:$0xff]  ;;  %v1420_v20 = vld [vmem:[%s1894_s3 + $0x1b0] sm:$0xff] }
  0x2d   :  { %389 = vmatpush1.msra.mxu1 %v1335_v44  ;;  %v1426_v5 = vld [vmem:[%s1894_s3 + $0x1a8] sm:$0xff]  ;;  %v1432_v21 = vld [vmem:[%s1894_s3 + $0x1a0] sm:$0xff]  ;;  %v1438_v6 = vld [vmem:[%s1894_s3 + $0x198] sm:$0xff] }
  0x2e   :  { %390 = vmatprep.subr.mxu1 %v1342_v62  ;;  %1966 = vst [vmem:[#allocation39_spill] sm:$0xff] %v1438_v6  ;;  %v1444_v22 = vld [vmem:[%s1894_s3 + $0x190] sm:$0xff]  ;;  %v1450_v7 = vld [vmem:[%s1894_s3 + $0x188] sm:$0xff]  ;;  %v1456_v23 = vld [vmem:[%s1894_s3 + $0x180] sm:$0xff] }
  0x2f   :  { %391 = vmatpush1.msra.mxu1 %v1348_v63  ;;  %1967 = vst [vmem:[#allocation40_spill] sm:$0xff] %v1456_v23  ;;  %v1462_v8 = vld [vmem:[%s1894_s3 + $0x178] sm:$0xff]  ;;  %v1468_v24 = vld [vmem:[%s1894_s3 + $0x170] sm:$0xff]  ;;  %v1474_v9 = vld [vmem:[%s1894_s3 + $0x168] sm:$0xff] }
  0x30   :  { %392 = vmatprep.subr.mxu1 %v1354_v33  ;;  %1968 = vst [vmem:[#allocation41_spill] sm:$0xff] %v1462_v8  ;;  %1969 = vst [vmem:[#allocation42_spill] sm:$0xff] %v1468_v24  ;;  %v1480_v25 = vld [vmem:[%s1894_s3 + $0x160] sm:$0xff]  ;;  %v1486_v10 = vld [vmem:[%s1894_s3 + $0x158] sm:$0xff] }
  0x31   :  { %393 = vmatpush1.msra.mxu1 %v1360_v40  ;;  %1970 = vst [vmem:[#allocation43_spill] sm:$0xff] %v1474_v9  ;;  %1971 = vst [vmem:[#allocation44_spill] sm:$0xff] %v1480_v25  ;;  %v1492_v26 = vld [vmem:[%s1894_s3 + $0x150] sm:$0xff]  ;;  %v1498_v11 = vld [vmem:[%s1894_s3 + $0x148] sm:$0xff] }
  0x32   :  { %394 = vmatprep.subr.mxu1 %v1366_v0  ;;  %1972 = vst [vmem:[#allocation45_spill] sm:$0xff] %v1486_v10  ;;  %1973 = vst [vmem:[#allocation46_spill] sm:$0xff] %v1492_v26  ;;  %v1504_v27 = vld [vmem:[%s1894_s3 + $0x140] sm:$0xff]  ;;  %v1510_v12 = vld [vmem:[%s1894_s3 + $0x138] sm:$0xff] }
  0x33   :  { %395 = vmatpush2.msra.mxu1 %v1372_v16  ;;  %1974 = vst [vmem:[#allocation47_spill] sm:$0xff] %v1498_v11  ;;  %1975 = vst [vmem:[#allocation48_spill] sm:$0xff] %v1504_v27  ;;  %v1516_v28 = vld [vmem:[%s1894_s3 + $0x130] sm:$0xff]  ;;  %v1522_v13 = vld [vmem:[%s1894_s3 + $0x128] sm:$0xff] }
  0x34   :  { %396 = vmatprep.subr.mxu1 %v1378_v1  ;;  %1976 = vst [vmem:[#allocation49_spill] sm:$0xff] %v1510_v12  ;;  %1977 = vst [vmem:[#allocation50_spill] sm:$0xff] %v1516_v28  ;;  %v1528_v29 = vld [vmem:[%s1894_s3 + $0x120] sm:$0xff]  ;;  %v1534_v14 = vld [vmem:[%s1894_s3 + $0x118] sm:$0xff] }
  0x35   :  { %397 = vmatpush2.msra.mxu1 %v1384_v17  ;;  %1978 = vst [vmem:[#allocation51_spill] sm:$0xff] %v1522_v13  ;;  %1979 = vst [vmem:[#allocation52_spill] sm:$0xff] %v1528_v29  ;;  %v1540_v30 = vld [vmem:[%s1894_s3 + $0x110] sm:$0xff]  ;;  %v1546_v15 = vld [vmem:[%s1894_s3 + $0x108] sm:$0xff] }
  0x36   :  { %398 = vmatprep.subr.mxu1 %v1390_v2  ;;  %1980 = vst [vmem:[#allocation53_spill] sm:$0xff] %v1534_v14  ;;  %1981 = vst [vmem:[#allocation54_spill] sm:$0xff] %v1540_v30  ;;  %v1552_v31 = vld [vmem:[%s1894_s3 + $0x100] sm:$0xff] }
  0x37   :  { %399 = vmatpush2.msra.mxu1 %v1396_v18  ;;  %1982 = vst [vmem:[#allocation55_spill] sm:$0xff] %v1546_v15  ;;  %1983 = vst [vmem:[#allocation56_spill] sm:$0xff] %v1552_v31 }
  0x38   :  { %400 = vmatprep.subr.mxu1 %v1402_v3 }
  0x39   :  { %401 = vmatpush2.msra.mxu1 %v1408_v19 }
  0x3a   :  { %402 = vmatprep.subr.mxu1 %v1414_v4 }
  0x3b   :  { %403 = vmatpush2.msra.mxu1 %v1420_v20 }
  0x3c   :  { %404 = vmatprep.subr.mxu1 %v1426_v5 }
  0x3d   :  { %405 = vmatpush2.msra.mxu1 %v1432_v21 }
  0x3e   :  { %406 = vmatprep.subr.mxu1 %v1438_v6 }
  0x3f   :  { %407 = vmatpush2.msra.mxu1 %v1444_v22 }
  0x40   :  { %408 = vmatprep.subr.mxu1 %v1450_v7 }
  0x41   :  { %409 = vmatpush2.msra.mxu1 %v1456_v23 }
  0x42   :  { %410 = vmatprep.subr.mxu1 %v1462_v8 }
  0x43   :  { %411 = vmatpush2.msra.mxu1 %v1468_v24 }
  0x44   :  { %412 = vmatprep.subr.mxu1 %v1474_v9 }
  0x45   :  { %413 = vmatpush2.msra.mxu1 %v1480_v25 }
  0x46   :  { %414 = vmatprep.subr.mxu1 %v1486_v10 }
  0x47   :  { %415 = vmatpush2.msra.mxu1 %v1492_v26 }
  0x48   :  { %416 = vmatprep.subr.mxu1 %v1498_v11 }
  0x49   :  { %417 = vmatpush2.msra.mxu1 %v1504_v27 }
  0x4a   :  { %418 = vmatprep.subr.mxu1 %v1510_v12 }
  0x4b   :  { %419 = vmatpush2.msra.mxu1 %v1516_v28 }
  0x4c   :  { %420 = vmatprep.subr.mxu1 %v1522_v13  ;;  %v294_v13 = vld [vmem:[%s1892_s1] sm:$0xff] }
  0x4d   :  { %421 = vmatpush2.msra.mxu1 %v1528_v29 }
  0x4e   :  { %422 = vmatprep.subr.mxu1 %v1534_v14 }
  0x4f   :  { %423 = vmatpush2.msra.mxu1 %v1540_v30 }
  0x50   :  { %424 = vmatprep.subr.mxu1 %v1546_v15 }
  0x51   :  { %425 = vmatpush2.msra.mxu1 %v1552_v31 }
  0x52   :  { %427 = vmatmul.mubr.f32.vlgmr.msra.gmra.mxu1 %v294_v13  ;;  %512 = vmatprep.subr.mxu1 %v1159_v35  ;;  %v128_v13 = vlaneseq }
  0x53   :  { %513 = vmatpush1.msra.mxu1 %v1164_v36 }
  0x54   :  { %514 = vmatprep.subr.mxu1 %v1169_v37 }
  0x55   :  { %515 = vmatpush1.msra.mxu1 %v1183_v41 }
  0x56   :  { %516 = vmatprep.subr.mxu1 %v1189_v42 }
  0x57   :  { %517 = vmatpush1.msra.mxu1 %v1194_v43 }
  0x58   :  { %518 = vmatprep.subr.mxu1 %v1203_v45 }
  0x59   :  { %519 = vmatpush1.msra.mxu1 %v1209_v46 }
  0x5a   :  { %520 = vmatprep.subr.mxu1 %v1215_v47 }
  0x5b   :  { %521 = vmatpush1.msra.mxu1 %v1221_v48 }
  0x5c   :  { %522 = vmatprep.subr.mxu1 %v1227_v49 }
  0x5d   :  { %523 = vmatpush1.msra.mxu1 %v1233_v50 }
  0x5e   :  { %524 = vmatprep.subr.mxu1 %v1239_v51 }
  0x5f   :  { %525 = vmatpush1.msra.mxu1 %v1245_v52 }
  0x60   :  { %526 = vmatprep.subr.mxu1 %v1251_v53 }
  0x61   :  { %527 = vmatpush1.msra.mxu1 %v1257_v54 }
  0x62   :  { %528 = vmatprep.subr.mxu1 %v1263_v55 }
  0x63   :  { %529 = vmatpush1.msra.mxu1 %v1269_v56 }
  0x64   :  { %530 = vmatprep.subr.mxu1 %v1275_v57 }
  0x65   :  { %531 = vmatpush1.msra.mxu1 %v1281_v58 }
  0x66   :  { %532 = vmatprep.subr.mxu1 %v1287_v59 }
  0x67   :  { %533 = vmatpush1.msra.mxu1 %v1293_v60 }
  0x68   :  { %534 = vmatprep.subr.mxu1 %v1298_v61 }
  0x69   :  { %535 = vmatpush1.msra.mxu1 %v1311_v32 }
  0x6a   :  { %536 = vmatprep.subr.mxu1 %v1317_v34 }
  0x6b   :  { %537 = vmatpush1.msra.mxu1 %v1323_v38 }
  0x6c   :  { %538 = vmatprep.subr.mxu1 %v1329_v39 }
  0x6d   :  { %539 = vmatpush1.msra.mxu1 %v1335_v44 }
  0x6e   :  { %540 = vmatprep.subr.mxu1 %v1342_v62 }
  0x6f   :  { %541 = vmatpush1.msra.mxu1 %v1348_v63 }
  0x70   :  { %542 = vmatprep.subr.mxu1 %v1354_v33 }
  0x71   :  { %543 = vmatpush1.msra.mxu1 %v1360_v40 }
  0x72   :  { %544 = vmatprep.subr.mxu1 %v1366_v0 }
  0x73   :  { %545 = vmatpush2.msra.mxu1 %v1372_v16 }
  0x74   :  { %546 = vmatprep.subr.mxu1 %v1378_v1 }
  0x75   :  { %547 = vmatpush2.msra.mxu1 %v1384_v17 }
  0x76   :  { %548 = vmatprep.subr.mxu1 %v1390_v2 }
  0x77   :  { %549 = vmatpush2.msra.mxu1 %v1396_v18 }
  0x78   :  { %550 = vmatprep.subr.mxu1 %v1402_v3 }
  0x79   :  { %551 = vmatpush2.msra.mxu1 %v1408_v19 }
  0x7a   :  { %552 = vmatprep.subr.mxu1 %v1414_v4 }
  0x7b   :  { %553 = vmatpush2.msra.mxu1 %v1420_v20 }
  0x7c   :  { %554 = vmatprep.subr.mxu1 %v1426_v5 }
  0x7d   :  { %555 = vmatpush2.msra.mxu1 %v1432_v21 }
  0x7e   :  { %556 = vmatprep.subr.mxu1 %v1438_v6  ;;  %v129_v6 = vand.u32 127, %v128_v13 }
  0x7f   :  { %557 = vmatpush2.msra.mxu1 %v1444_v22 }
  0x80   :  { %558 = vmatprep.subr.mxu1 %v1450_v7 }
  0x81   :  { %559 = vmatpush2.msra.mxu1 %v1456_v23 }
  0x82   :  { %560 = vmatprep.subr.mxu1 %v1462_v8 }
  0x83   :  { %561 = vmatpush2.msra.mxu1 %v1468_v24 }
  0x84   :  { %562 = vmatprep.subr.mxu1 %v1474_v9  ;;  %v1984_v9 = vld [vmem:[#allocation51_spill] sm:$0xff] }
  0x85   :  { %563 = vmatpush2.msra.mxu1 %v1480_v25  ;;  %v1985_v25 = vmov 0.0  }
  0x86   :  { %564 = vmatprep.subr.mxu1 %v1486_v10 }
  0x87   :  { %565 = vmatpush2.msra.mxu1 %v1492_v26 }
  0x88   :  { %566 = vmatprep.subr.mxu1 %v1498_v11 }
  0x89   :  { %567 = vmatpush2.msra.mxu1 %v1504_v27 }
  0x8a   :  { %568 = vmatprep.subr.mxu1 %v1510_v12 }
  0x8b   :  { %569 = vmatpush2.msra.mxu1 %v1516_v28 }
  0x8c   :  { %v137_v23 = vpop.permute.xlu0 %136  ;;  %570 = vmatprep.subr.mxu1 %v1984_v9 }
  0x8d   :  { %v143_v8 = vpop.permute.xlu1 %142  ;;  %vm150_vm2 = vcmp.eq.s32.totalorder %v129_v6, %v137_v23  ;;  %571 = vmatpush2.msra.mxu1 %v1528_v29 }
  0x8e   :  { %v872_v24 = vsel %vm150_vm2, 1.0, %v1985_v25  ;;  %572 = vmatprep.subr.mxu1 %v1534_v14  ;;  %vm152_vm4 = vcmp.eq.s32.totalorder %v129_v6, %v143_v8 }
  0x8f   :  { %879 = vmatmul.mubr.msk.f32.vlgmr.msra.gmra.mxu0 %vm168_vm1, %v872_v24  ;;  %573 = vmatpush2.msra.mxu1 %v1540_v30  ;;  %v874_v24 = vsel %vm152_vm4, 1.0, %v1985_v25 }
  0x90   :  { %v140_v13 = vpop.permute.xlu0 %139  ;;  %259 = vmatprep.mubr.f32.mxu0 %v1985_v25  ;;  %438 = vmatpush1.msra.mxu0 %v1164_v36 }
  0x91   :  { %vm151_vm3 = vcmp.eq.s32.totalorder %v129_v6, %v140_v13  ;;  %439 = vmatprep.subr.mxu0 %v1169_v37  ;;  %v146_v9 = vpop.permute.xlu1 %145  ;;  %574 = vmatprep.subr.mxu1 %v1546_v15 }
  0x92   :  { %v873_v23 = vsel %vm151_vm3, 1.0, %v1985_v25  ;;  %440 = vmatpush1.msra.mxu0 %v1183_v41  ;;  %vm153_vm5 = vcmp.eq.s32.totalorder %v129_v6, %v146_v9  ;;  %575 = vmatpush2.msra.mxu1 %v1552_v31 }
  0x93   :  { %880 = vmatmul.mubr.msk.f32.gmra.mxu0 %vm168_vm1, %v873_v23  ;;  %441 = vmatprep.subr.mxu0 %v1189_v42  ;;  %v875_v13 = vsel %vm153_vm5, 1.0, %v1985_v25  ;;  %v1988_v23 = vld [vmem:[#allocation41_spill] sm:$0xff] }
  0x94   :  { %265 = vmatprep.mubr.f32.mxu0 %v1985_v25  ;;  %442 = vmatpush1.msra.mxu0 %v1194_v43  ;;  %v149_v8 = vpop.permute.xlu0 %148 }
  0x95   :  { %443 = vmatprep.subr.mxu0 %v1203_v45  ;;  %662 = vmatprep.subr.mxu1 %v1159_v35  ;;  %vm154_vm6 = vcmp.eq.s32.totalorder %v129_v6, %v149_v8  ;;  %v1986_v6 = vld [vmem:[#allocation39_spill] sm:$0xff] }
  0x96   :  { %444 = vmatpush1.msra.mxu0 %v1209_v46  ;;  %v876_v9 = vsel %vm154_vm6, 1.0, %v1985_v25  ;;  %v1990_v8 = vld [vmem:[#allocation43_spill] sm:$0xff] }
  0x97   :  { %881 = vmatmul.mubr.msk.f32.gmra.mxu0 %vm168_vm1, %v874_v24  ;;  %445 = vmatprep.subr.mxu0 %v1215_v47  ;;  %v1989_v24 = vld [vmem:[#allocation42_spill] sm:$0xff] }
  0x98   :  { %271 = vmatprep.mubr.f32.mxu0 %v1985_v25  ;;  %446 = vmatpush1.msra.mxu0 %v1221_v48 }
  0x99   :  { %447 = vmatprep.subr.mxu0 %v1227_v49 }
  0x9a   :  { %448 = vmatpush1.msra.mxu0 %v1233_v50 }
  0x9b   :  { %882 = vmatmul.mubr.msk.f32.gmra.mxu0 %vm168_vm1, %v875_v13  ;;  %449 = vmatprep.subr.mxu0 %v1239_v51  ;;  %v1991_v13 = vld [vmem:[#allocation44_spill] sm:$0xff] }
  0x9c   :  { %277 = vmatprep.mubr.f32.mxu0 %v1985_v25  ;;  %450 = vmatpush1.msra.mxu0 %v1245_v52  ;;  %v1987_v25 = vld [vmem:[#allocation40_spill] sm:$0xff] }
  0x9d   :  { %451 = vmatprep.subr.mxu0 %v1251_v53 }
  0x9e   :  { %452 = vmatpush1.msra.mxu0 %v1257_v54 }
  0x9f   :  { %883 = vmatmul.mubr.msk.f32.gmra.mxu0 %vm168_vm1, %v876_v9  ;;  %453 = vmatprep.subr.mxu0 %v1263_v55  ;;  %v1992_v9 = vld [vmem:[#allocation51_spill] sm:$0xff] }
  0xa0   :  { %454 = vmatpush1.msra.mxu0 %v1269_v56 }
  0xa1   :  { %455 = vmatprep.subr.mxu0 %v1275_v57 }
  0xa2   :  { %456 = vmatpush1.msra.mxu0 %v1281_v58 }
  0xa3   :  { %457 = vmatprep.subr.mxu0 %v1287_v59 }
  0xa4   :  { %458 = vmatpush1.msra.mxu0 %v1293_v60 }
  0xa5   :  { %459 = vmatprep.subr.mxu0 %v1298_v61 }
  0xa6   :  { %460 = vmatpush1.msra.mxu0 %v1311_v32 }
  0xa7   :  { %461 = vmatprep.subr.mxu0 %v1317_v34 }
  0xa8   :  { %462 = vmatpush1.msra.mxu0 %v1323_v38 }
  0xa9   :  { %463 = vmatprep.subr.mxu0 %v1329_v39 }
  0xaa   :  { %464 = vmatpush1.msra.mxu0 %v1335_v44 }
  0xab   :  { %465 = vmatprep.subr.mxu0 %v1342_v62 }
  0xac   :  { %466 = vmatpush1.msra.mxu0 %v1348_v63 }
  0xad   :  { %467 = vmatprep.subr.mxu0 %v1354_v33 }
  0xae   :  { %468 = vmatpush1.msra.mxu0 %v1360_v40 }
  0xaf   :  { %469 = vmatprep.subr.mxu0 %v1366_v0 }
  0xb0   :  { %470 = vmatpush2.msra.mxu0 %v1372_v16 }
  0xb1   :  { %471 = vmatprep.subr.mxu0 %v1378_v1 }
  0xb2   :  { %472 = vmatpush2.msra.mxu0 %v1384_v17 }
  0xb3   :  { %473 = vmatprep.subr.mxu0 %v1390_v2 }
  0xb4   :  { %474 = vmatpush2.msra.mxu0 %v1396_v18 }
  0xb5   :  { %475 = vmatprep.subr.mxu0 %v1402_v3 }
  0xb6   :  { %476 = vmatpush2.msra.mxu0 %v1408_v19 }
  0xb7   :  { %477 = vmatprep.subr.mxu0 %v1414_v4 }
  0xb8   :  { %478 = vmatpush2.msra.mxu0 %v1420_v20 }
  0xb9   :  { %479 = vmatprep.subr.mxu0 %v1426_v5 }
  0xba   :  { %480 = vmatpush2.msra.mxu0 %v1432_v21 }
  0xbb   :  { %481 = vmatprep.subr.mxu0 %v1986_v6 }
  0xbc   :  { %482 = vmatpush2.msra.mxu0 %v1444_v22 }
  0xbd   :  { %483 = vmatprep.subr.mxu0 %v1450_v7 }
  0xbe   :  { %484 = vmatpush2.msra.mxu0 %v1987_v25 }
  0xbf   :  { %485 = vmatprep.subr.mxu0 %v1988_v23 }
  0xc0   :  { %486 = vmatpush2.msra.mxu0 %v1989_v24 }
  0xc1   :  { %487 = vmatprep.subr.mxu0 %v1990_v8 }
  0xc2   :  { %488 = vmatpush2.msra.mxu0 %v1991_v13 }
  0xc3   :  { %489 = vmatprep.subr.mxu0 %v1486_v10 }
  0xc4   :  { %490 = vmatpush2.msra.mxu0 %v1492_v26 }
  0xc5   :  { %491 = vmatprep.subr.mxu0 %v1498_v11 }
  0xc6   :  { %492 = vmatpush2.msra.mxu0 %v1504_v27 }
  0xc7   :  { %493 = vmatprep.subr.mxu0 %v1510_v12 }
  0xc8   :  { %494 = vmatpush2.msra.mxu0 %v1516_v28 }
  0xc9   :  { %495 = vmatprep.subr.mxu0 %v1992_v9 }
  0xca   :  { %496 = vmatpush2.msra.mxu0 %v1528_v29 }
  0xcb   :  { %497 = vmatprep.subr.mxu0 %v1534_v14 }
  0xcc   :  { %498 = vmatpush2.msra.mxu0 %v1540_v30 }
  0xcd   :  { %499 = vmatprep.subr.mxu0 %v1546_v15 }
  0xce   :  { %500 = vmatpush2.msra.mxu0 %v1552_v31 }
  0xcf   :  { %587 = vmatprep.subr.mxu0 %v1159_v35  ;;  %v2000_v35 = vld [vmem:[#allocation52_spill] sm:$0xff] }
 0x112   :  { %v428_v11 = vpop.f32.mrf.mxu1 }
 0x114   :  { %v430_v12 = vpop.f32.mrf.mxu1 }
 0x14f   :  { %v255_v27 = vpop.f32.mrf.mxu0 }
 0x150   :  { %v429_v26 = vadd.f32 %v428_v11, %v255_v27  ;;  %v1994_v11 = vld [vmem:[#allocation46_spill] sm:$0xff]  ;;  %v1997_v27 = vld [vmem:[#allocation49_spill] sm:$0xff] }
 0x151   :  { %v257_v10 = vpop.f32.mrf.mxu0 }
 0x152   :  { %v431_v28 = vadd.f32 %v430_v12, %v257_v10  ;;  %v1993_v10 = vld [vmem:[#allocation45_spill] sm:$0xff]  ;;  %v1995_v12 = vld [vmem:[#allocation47_spill] sm:$0xff] }
 0x154   :  { %926 = vtanh.f32 %v431_v28  ;;  %v1998_v28 = vld [vmem:[#allocation50_spill] sm:$0xff] }
 0x155   :  { %928 = vtanh.f32 %v429_v26  ;;  %v1996_v26 = vld [vmem:[#allocation48_spill] sm:$0xff] }
 0x161   :  { %v927_v9 = vpop.eup %926 }
 0x162   :  { %v929_v29 = vpop.eup %928  ;;  %501 = vmatprep.mubr.f32.mxu0 %v927_v9  ;;  %v261_v9 = vpop.f32.mrf.mxu0 }
 0x163   :  { %502 = vmatmul.mubr.f32.vlgmr.msra.gmra.mxu0 %v929_v29  ;;  %v1999_v29 = vld [vmem:[#allocation51_spill] sm:$0xff] }
 0x164   :  { %588 = vmatpush1.msra.mxu0 %v1164_v36 }
 0x165   :  { %589 = vmatprep.subr.mxu0 %v1169_v37 }
 0x166   :  { %590 = vmatpush1.msra.mxu0 %v1183_v41 }
 0x167   :  { %591 = vmatprep.subr.mxu0 %v1189_v42 }
 0x168   :  { %592 = vmatpush1.msra.mxu0 %v1194_v43 }
 0x169   :  { %593 = vmatprep.subr.mxu0 %v1203_v45 }
 0x16a   :  { %594 = vmatpush1.msra.mxu0 %v1209_v46 }
 0x16b   :  { %595 = vmatprep.subr.mxu0 %v1215_v47 }
 0x16c   :  { %596 = vmatpush1.msra.mxu0 %v1221_v48 }
 0x16d   :  { %597 = vmatprep.subr.mxu0 %v1227_v49 }
 0x16e   :  { %598 = vmatpush1.msra.mxu0 %v1233_v50 }
 0x16f   :  { %599 = vmatprep.subr.mxu0 %v1239_v51 }
 0x170   :  { %600 = vmatpush1.msra.mxu0 %v1245_v52 }
 0x171   :  { %601 = vmatprep.subr.mxu0 %v1251_v53 }
 0x172   :  { %602 = vmatpush1.msra.mxu0 %v1257_v54 }
 0x173   :  { %603 = vmatprep.subr.mxu0 %v1263_v55 }
 0x174   :  { %604 = vmatpush1.msra.mxu0 %v1269_v56 }
 0x175   :  { %605 = vmatprep.subr.mxu0 %v1275_v57 }
 0x176   :  { %606 = vmatpush1.msra.mxu0 %v1281_v58 }
 0x177   :  { %607 = vmatprep.subr.mxu0 %v1287_v59 }
 0x178   :  { %608 = vmatpush1.msra.mxu0 %v1293_v60 }
 0x179   :  { %609 = vmatprep.subr.mxu0 %v1298_v61 }
 0x17a   :  { %610 = vmatpush1.msra.mxu0 %v1311_v32 }
 0x17b   :  { %611 = vmatprep.subr.mxu0 %v1317_v34 }
 0x17c   :  { %612 = vmatpush1.msra.mxu0 %v1323_v38 }
 0x17d   :  { %613 = vmatprep.subr.mxu0 %v1329_v39 }
 0x17e   :  { %614 = vmatpush1.msra.mxu0 %v1335_v44 }
 0x17f   :  { %615 = vmatprep.subr.mxu0 %v1342_v62 }
 0x180   :  { %616 = vmatpush1.msra.mxu0 %v1348_v63 }
 0x181   :  { %617 = vmatprep.subr.mxu0 %v1354_v33 }
 0x182   :  { %618 = vmatpush1.msra.mxu0 %v1360_v40 }
 0x183   :  { %619 = vmatprep.subr.mxu0 %v1366_v0 }
 0x184   :  { %620 = vmatpush2.msra.mxu0 %v1372_v16 }
 0x185   :  { %621 = vmatprep.subr.mxu0 %v1378_v1 }
 0x186   :  { %622 = vmatpush2.msra.mxu0 %v1384_v17 }
 0x187   :  { %623 = vmatprep.subr.mxu0 %v1390_v2 }
 0x188   :  { %624 = vmatpush2.msra.mxu0 %v1396_v18 }
 0x189   :  { %625 = vmatprep.subr.mxu0 %v1402_v3 }
 0x18a   :  { %626 = vmatpush2.msra.mxu0 %v1408_v19 }
 0x18b   :  { %627 = vmatprep.subr.mxu0 %v1414_v4 }
 0x18c   :  { %628 = vmatpush2.msra.mxu0 %v1420_v20 }
 0x18d   :  { %629 = vmatprep.subr.mxu0 %v1426_v5 }
 0x18e   :  { %630 = vmatpush2.msra.mxu0 %v1432_v21 }
 0x18f   :  { %631 = vmatprep.subr.mxu0 %v1986_v6 }
 0x190   :  { %632 = vmatpush2.msra.mxu0 %v1444_v22 }
 0x191   :  { %633 = vmatprep.subr.mxu0 %v1450_v7 }
 0x192   :  { %634 = vmatpush2.msra.mxu0 %v1987_v25 }
 0x193   :  { %635 = vmatprep.subr.mxu0 %v1988_v23 }
 0x194   :  { %636 = vmatpush2.msra.mxu0 %v1989_v24 }
 0x195   :  { %637 = vmatprep.subr.mxu0 %v1990_v8 }
 0x196   :  { %638 = vmatpush2.msra.mxu0 %v1991_v13 }
 0x197   :  { %639 = vmatprep.subr.mxu0 %v1993_v10 }
 0x198   :  { %640 = vmatpush2.msra.mxu0 %v1994_v11 }
 0x199   :  { %641 = vmatprep.subr.mxu0 %v1995_v12  ;;  %v263_v12 = vpop.f32.mrf.mxu0 }
 0x19a   :  { %642 = vmatpush2.msra.mxu0 %v1996_v26 }
 0x19b   :  { %643 = vmatprep.subr.mxu0 %v1997_v27  ;;  %v1766_v11 = vpop.f32.mrf.mxu0 }
 0x19c   :  { %644 = vmatpush2.msra.mxu0 %v1998_v28 }
 0x19d   :  { %645 = vmatprep.subr.mxu0 %v1999_v29  ;;  %v1768_v26 = vpop.f32.mrf.mxu0 }
 0x19e   :  { %646 = vmatpush2.msra.mxu0 %v2000_v35 }
 0x19f   :  { %647 = vmatprep.subr.mxu0 %v1534_v14  ;;  %v1770_v27 = vpop.f32.mrf.mxu0 }
 0x1a0   :  { %648 = vmatpush2.msra.mxu0 %v1540_v30 }
 0x1a1   :  { %649 = vmatprep.subr.mxu0 %v1546_v15  ;;  %v1772_v28 = vpop.f32.mrf.mxu0 }
 0x1a2   :  { %650 = vmatpush2.msra.mxu0 %v1552_v31 }
 0x1a3   :  { %v1774_v29 = vpop.f32.mrf.mxu0 }
 0x1a5   :  { %v1776_v35 = vpop.f32.mrf.mxu0 }
 0x223   :  { %v503_v14 = vpop.f32.mrf.mxu0 }
 0x224   :  { %v504_v30 = vadd.f32 %v503_v14, %v261_v9  ;;  %v2008_v14 = vld [vmem:[#allocation51_spill] sm:$0xff] }
 0x225   :  { %v505_v10 = vpop.f32.mrf.mxu0 }
 0x226   :  { %v506_v15 = vadd.f32 %v505_v10, %v263_v12 }
 0x228   :  { %930 = vtanh.f32 %v506_v15  ;;  %v2009_v15 = vld [vmem:[#allocation52_spill] sm:$0xff] }
 0x229   :  { %932 = vtanh.f32 %v504_v30 }
 0x235   :  { %v931_v31 = vpop.eup %930 }
 0x236   :  { %v933_v13 = vpop.eup %932  ;;  %576 = vmatprep.mubr.f32.mxu1 %v931_v31 }
 0x237   :  { %577 = vmatmul.mubr.f32.vlgmr.msra.gmra.mxu1 %v933_v13 }
 0x238   :  { %663 = vmatpush1.msra.mxu1 %v1164_v36 }
 0x239   :  { %664 = vmatprep.subr.mxu1 %v1169_v37 }
 0x23a   :  { %665 = vmatpush1.msra.mxu1 %v1183_v41 }
 0x23b   :  { %666 = vmatprep.subr.mxu1 %v1189_v42 }
 0x23c   :  { %667 = vmatpush1.msra.mxu1 %v1194_v43 }
 0x23d   :  { %668 = vmatprep.subr.mxu1 %v1203_v45 }
 0x23e   :  { %669 = vmatpush1.msra.mxu1 %v1209_v46 }
 0x23f   :  { %670 = vmatprep.subr.mxu1 %v1215_v47 }
 0x240   :  { %671 = vmatpush1.msra.mxu1 %v1221_v48 }
 0x241   :  { %672 = vmatprep.subr.mxu1 %v1227_v49 }
 0x242   :  { %673 = vmatpush1.msra.mxu1 %v1233_v50 }
 0x243   :  { %674 = vmatprep.subr.mxu1 %v1239_v51 }
 0x244   :  { %675 = vmatpush1.msra.mxu1 %v1245_v52  ;;  %v2014_v52 = vld [vmem:[#allocation38_spill] sm:$0xff] }
 0x245   :  { %676 = vmatprep.subr.mxu1 %v1251_v53  ;;  %886 = vmatprep.subr.mxu0 %v2014_v52 }
 0x246   :  { %677 = vmatpush1.msra.mxu1 %v1257_v54 }
 0x247   :  { %678 = vmatprep.subr.mxu1 %v1263_v55 }
 0x248   :  { %679 = vmatpush1.msra.mxu1 %v1269_v56 }
 0x249   :  { %680 = vmatprep.subr.mxu1 %v1275_v57 }
 0x24a   :  { %681 = vmatpush1.msra.mxu1 %v1281_v58 }
 0x24b   :  { %682 = vmatprep.subr.mxu1 %v1287_v59 }
 0x24c   :  { %683 = vmatpush1.msra.mxu1 %v1293_v60 }
 0x24d   :  { %684 = vmatprep.subr.mxu1 %v1298_v61 }
 0x24e   :  { %685 = vmatpush1.msra.mxu1 %v1311_v32 }
 0x24f   :  { %686 = vmatprep.subr.mxu1 %v1317_v34 }
 0x250   :  { %687 = vmatpush1.msra.mxu1 %v1323_v38 }
 0x251   :  { %688 = vmatprep.subr.mxu1 %v1329_v39 }
 0x252   :  { %689 = vmatpush1.msra.mxu1 %v1335_v44 }
 0x253   :  { %690 = vmatprep.subr.mxu1 %v1342_v62 }
 0x254   :  { %691 = vmatpush1.msra.mxu1 %v1348_v63 }
 0x255   :  { %692 = vmatprep.subr.mxu1 %v1354_v33 }
 0x256   :  { %693 = vmatpush1.msra.mxu1 %v1360_v40 }
 0x257   :  { %694 = vmatprep.subr.mxu1 %v1366_v0  ;;  %v2001_v0 = vld [vmem:[#allocation44_spill] sm:$0xff] }
 0x258   :  { %695 = vmatpush2.msra.mxu1 %v1372_v16  ;;  %v2010_v16 = vld [vmem:[#allocation53_spill] sm:$0xff] }
 0x259   :  { %696 = vmatprep.subr.mxu1 %v1378_v1  ;;  %v2002_v1 = vld [vmem:[#allocation45_spill] sm:$0xff] }
 0x25a   :  { %697 = vmatpush2.msra.mxu1 %v1384_v17  ;;  %v2011_v17 = vld [vmem:[#allocation54_spill] sm:$0xff] }
 0x25b   :  { %698 = vmatprep.subr.mxu1 %v1390_v2  ;;  %v2003_v2 = vld [vmem:[#allocation46_spill] sm:$0xff] }
 0x25c   :  { %699 = vmatpush2.msra.mxu1 %v1396_v18  ;;  %v2012_v18 = vld [vmem:[#allocation55_spill] sm:$0xff] }
 0x25d   :  { %700 = vmatprep.subr.mxu1 %v1402_v3  ;;  %v2004_v3 = vld [vmem:[#allocation47_spill] sm:$0xff] }
 0x25e   :  { %701 = vmatpush2.msra.mxu1 %v1408_v19  ;;  %v2013_v19 = vld [vmem:[#allocation56_spill] sm:$0xff] }
 0x25f   :  { %702 = vmatprep.subr.mxu1 %v1414_v4  ;;  %v2005_v4 = vld [vmem:[#allocation48_spill] sm:$0xff] }
 0x260   :  { %703 = vmatpush2.msra.mxu1 %v1420_v20 }
 0x261   :  { %704 = vmatprep.subr.mxu1 %v1426_v5  ;;  %v2006_v5 = vld [vmem:[#allocation49_spill] sm:$0xff] }
 0x262   :  { %705 = vmatpush2.msra.mxu1 %v1432_v21 }
 0x263   :  { %706 = vmatprep.subr.mxu1 %v1986_v6 }
 0x264   :  { %707 = vmatpush2.msra.mxu1 %v1444_v22 }
 0x265   :  { %708 = vmatprep.subr.mxu1 %v1450_v7  ;;  %v2007_v7 = vld [vmem:[#allocation50_spill] sm:$0xff] }
 0x266   :  { %709 = vmatpush2.msra.mxu1 %v1987_v25 }
 0x267   :  { %710 = vmatprep.subr.mxu1 %v1988_v23 }
 0x268   :  { %711 = vmatpush2.msra.mxu1 %v1989_v24 }
 0x269   :  { %712 = vmatprep.subr.mxu1 %v1990_v8 }
 0x26a   :  { %713 = vmatpush2.msra.mxu1 %v2001_v0 }
 0x26b   :  { %714 = vmatprep.subr.mxu1 %v2002_v1 }
 0x26c   :  { %715 = vmatpush2.msra.mxu1 %v2003_v2 }
 0x26d   :  { %716 = vmatprep.subr.mxu1 %v2004_v3 }
 0x26e   :  { %717 = vmatpush2.msra.mxu1 %v2005_v4 }
 0x26f   :  { %718 = vmatprep.subr.mxu1 %v2006_v5 }
 0x270   :  { %719 = vmatpush2.msra.mxu1 %v2007_v7 }
 0x271   :  { %720 = vmatprep.subr.mxu1 %v2008_v14 }
 0x272   :  { %721 = vmatpush2.msra.mxu1 %v2009_v15 }
 0x273   :  { %722 = vmatprep.subr.mxu1 %v2010_v16 }
 0x274   :  { %723 = vmatpush2.msra.mxu1 %v2011_v17 }
 0x275   :  { %724 = vmatprep.subr.mxu1 %v2012_v18 }
 0x276   :  { %725 = vmatpush2.msra.mxu1 %v2013_v19 }
 0x2f7   :  { %v578_v20 = vpop.f32.mrf.mxu1 }
 0x2f8   :  { %v579_v21 = vadd.f32 %v578_v20, %v1766_v11 }
 0x2f9   :  { %v580_v22 = vpop.f32.mrf.mxu1 }
 0x2fa   :  { %v581_v30 = vadd.f32 %v580_v22, %v1768_v26 }
 0x2fc   :  { %934 = vtanh.f32 %v581_v30 }
 0x2fd   :  { %936 = vtanh.f32 %v579_v21 }
 0x309   :  { %v935_v31 = vpop.eup %934 }
 0x30a   :  { %v937_v36 = vpop.eup %936  ;;  %651 = vmatprep.mubr.f32.mxu0 %v935_v31 }
 0x30b   :  { %652 = vmatmul.mubr.f32.vlgmr.msra.gmra.mxu0 %v937_v36 }
 0x3cb   :  { %v653_v37 = vpop.f32.mrf.mxu0 }
 0x3cc   :  { %v654_v40 = vadd.f32 %v653_v37, %v1770_v27 }
 0x3cd   :  { %v655_v41 = vpop.f32.mrf.mxu0 }
 0x3ce   :  { %v656_v42 = vadd.f32 %v655_v41, %v1772_v28 }
 0x3d0   :  { %938 = vtanh.f32 %v656_v42 }
 0x3d1   :  { %940 = vtanh.f32 %v654_v40 }
 0x3dd   :  { %v939_v43 = vpop.eup %938 }
 0x3de   :  { %v941_v45 = vpop.eup %940  ;;  %726 = vmatprep.mubr.f32.mxu1 %v939_v43 }
 0x3df   :  { %727 = vmatmul.mubr.f32.vlgmr.msra.gmra.mxu1 %v941_v45 }
 0x49f   :  { %v728_v46 = vpop.f32.mrf.mxu1 }
 0x4a0   :  { %v729_v47 = vadd.f32 %v728_v46, %v1774_v29 }
 0x4a1   :  { %v730_v48 = vpop.f32.mrf.mxu1 }
 0x4a2   :  { %942 = vtanh.f32 %v729_v47  ;;  %v731_v49 = vadd.f32 %v730_v48, %v1776_v35 }
 0x4a4   :  { %944 = vtanh.f32 %v731_v49 }
 0x4af   :  { %v943_v50 = vpop.eup %942 }
 0x4b0   :  { %735 = vst [vmem:[%s1898_s7] sm:$0xff] %v943_v50 }
 0x4b1   :  { %v945_v51 = vpop.eup %944 }
 0x4b2   :  { %736 = vst [vmem:[%s1898_s7 + $0x8] sm:$0xff] %v945_v51  ;;  %843 = vmatprep.mubr.f32.mxu0 %v945_v51 }
 0x4b3   :  { %946 = dma.done.wait [#allocation4], 4096 }
 0x4b4   :  { %947 = vsyncadd [#allocation4], 4294963200  ;;  %v2015_v53 = vld [vmem:[#allocation22_spill] sm:$0xff]  ;;  %v2016_v54 = vld [vmem:[#allocation37_spill] sm:$0xff] }
 0x4b5   :  { %887 = vmatpush3.msra.mxu0 %v2015_v53  ;;  %v2017_v55 = vld [vmem:[#allocation21_spill] sm:$0xff]  ;;  %v2018_v56 = vld [vmem:[#allocation36_spill] sm:$0xff]  ;;  %v2020_v58 = vld [vmem:[#allocation35_spill] sm:$0xff] }
 0x4b6   :  { %888 = vmatprep.subr.mxu0 %v2016_v54  ;;  %v2019_v57 = vld [vmem:[#allocation20_spill] sm:$0xff]  ;;  %v2021_v59 = vld [vmem:[#allocation19_spill] sm:$0xff]  ;;  %v2022_v60 = vld [vmem:[#allocation34_spill] sm:$0xff] }
 0x4b7   :  { %889 = vmatpush3.msra.mxu0 %v2017_v55  ;;  %v2023_v61 = vld [vmem:[#allocation18_spill] sm:$0xff]  ;;  %v2024_v32 = vld [vmem:[#allocation33_spill] sm:$0xff]  ;;  %v2026_v38 = vld [vmem:[#allocation32_spill] sm:$0xff] }
 0x4b8   :  { %890 = vmatprep.subr.mxu0 %v2018_v56  ;;  %v2025_v34 = vld [vmem:[#allocation17_spill] sm:$0xff]  ;;  %v2027_v39 = vld [vmem:[#allocation16_spill] sm:$0xff]  ;;  %v2028_v44 = vld [vmem:[#allocation31_spill] sm:$0xff] }
 0x4b9   :  { %891 = vmatpush3.msra.mxu0 %v2019_v57  ;;  %v2029_v62 = vld [vmem:[#allocation15_spill] sm:$0xff]  ;;  %v2030_v63 = vld [vmem:[#allocation30_spill] sm:$0xff]  ;;  %v2032_v6 = vld [vmem:[#allocation29_spill] sm:$0xff] }
 0x4ba   :  { %892 = vmatprep.subr.mxu0 %v2020_v58  ;;  %v2031_v33 = vld [vmem:[#allocation14_spill] sm:$0xff]  ;;  %v2033_v25 = vld [vmem:[#allocation13_spill] sm:$0xff]  ;;  %v2034_v23 = vld [vmem:[#allocation28_spill] sm:$0xff] }
 0x4bb   :  { %893 = vmatpush3.msra.mxu0 %v2021_v59  ;;  %v2035_v24 = vld [vmem:[#allocation12_spill] sm:$0xff]  ;;  %v2036_v8 = vld [vmem:[#allocation27_spill] sm:$0xff]  ;;  %v2038_v10 = vld [vmem:[#allocation26_spill] sm:$0xff] }
 0x4bc   :  { %894 = vmatprep.subr.mxu0 %v2022_v60  ;;  %v2037_v13 = vld [vmem:[#allocation11_spill] sm:$0xff]  ;;  %v2039_v11 = vld [vmem:[#allocation10_spill] sm:$0xff]  ;;  %v2040_v12 = vld [vmem:[#allocation25_spill] sm:$0xff] }
 0x4bd   :  { %895 = vmatpush3.msra.mxu0 %v2023_v61  ;;  %v2041_v26 = vld [vmem:[#allocation9_spill] sm:$0xff]  ;;  %v2042_v27 = vld [vmem:[#allocation24_spill] sm:$0xff]  ;;  %v2044_v29 = vld [vmem:[#allocation23_spill] sm:$0xff] }
 0x4be   :  { %896 = vmatprep.subr.mxu0 %v2024_v32  ;;  %v2043_v28 = vld [vmem:[#allocation8_spill] sm:$0xff]  ;;  %v2045_v35 = vld [vmem:[#allocation7_spill] sm:$0xff] }
 0x4bf   :  { %897 = vmatpush3.msra.mxu0 %v2025_v34  ;;  %v884_v0 = vld [vmem:[%s1896_s5] ss:$0 sm:$0xff] }
 0x4c0   :  { %898 = vmatprep.subr.mxu0 %v2026_v38 }
 0x4c1   :  { %899 = vmatpush3.msra.mxu0 %v2027_v39 }
 0x4c2   :  { %900 = vmatprep.subr.mxu0 %v2028_v44 }
 0x4c3   :  { %901 = vmatpush3.msra.mxu0 %v2029_v62 }
 0x4c4   :  { %902 = vmatprep.subr.mxu0 %v2030_v63 }
 0x4c5   :  { %903 = vmatpush3.msra.mxu0 %v2031_v33 }
 0x4c6   :  { %904 = vmatprep.subr.mxu0 %v2032_v6 }
 0x4c7   :  { %905 = vmatpush3.msra.mxu0 %v2033_v25 }
 0x4c8   :  { %906 = vmatprep.subr.mxu0 %v2034_v23 }
 0x4c9   :  { %907 = vmatpush3.msra.mxu0 %v2035_v24 }
 0x4ca   :  { %908 = vmatprep.subr.mxu0 %v2036_v8 }
 0x4cb   :  { %909 = vmatpush3.msra.mxu0 %v2037_v13 }
 0x4cc   :  { %910 = vmatprep.subr.mxu0 %v2038_v10 }
 0x4cd   :  { %911 = vmatpush3.msra.mxu0 %v2039_v11 }
 0x4ce   :  { %912 = vmatprep.subr.mxu0 %v2040_v12 }
 0x4cf   :  { %913 = vmatpush3.msra.mxu0 %v2041_v26 }
 0x4d0   :  { %914 = vmatprep.subr.mxu0 %v2042_v27 }
 0x4d1   :  { %915 = vmatpush3.msra.mxu0 %v2043_v28 }
 0x4d2   :  { %916 = vmatprep.subr.mxu0 %v2044_v29 }
 0x4d3   :  { %917 = vmatpush3.msra.mxu0 %v2045_v35 }
 0x4d4   :  { %844 = vmatmul.mubr.f32.vlgmr.msra.gmra.mxu0 %v943_v50 }
 0x594   :  { %v918_v9 = vpop.f32.mrf.mxu0 }
 0x596   :  { %v919_v1 = vpop.f32.mrf.mxu0 }
 0x597   :  { %v920_v2 = vadd.f32 %v919_v1, %v918_v9 }
 0x599   :  { %v846_v3 = vadd.f32 %v920_v2, %v884_v0 }
 0x59b   :  { %849 = vst [vmem:[%s1897_s6] sm:$0xff] %v846_v3 }
 0x59c   :  { %858 = vsyncmov [#allocation4] }
 0x59f   :  { %s859_s15 = vpop.sfrf %858 }
 0x5a0   :  { %p885_p0 = scmp.ne.s32.totalorder %s859_s15, 0 }
 0x5a2   :  { %863 = shalt.err (%p885_p0)  }

</bundles_post_ra>
